<compile_context>
chip_gen: v5e
topology: v5e:2x2
jax: 0.10.0
libtpu: 0.0.40
codegen_flags: <defaults>
</compile_context>

<pallas_src>
import math
import jax
import jax.numpy as jnp
from jax import lax
from jax.experimental import pallas as pl
from jax.experimental.pallas import tpu as pltpu


def _round_up(x, m):
    return ((x + m - 1) // m) * m


# ---------------------------------------------------------------------------
# Kernel body: one (batch-block, time-chunk) grid step, all layers + heads
# ---------------------------------------------------------------------------

def _make_kernel(num_layers, T, Tc, nt, Bb, Fp, H, Gp, unroll, mask_tail):
    """Ref order (positional):
      x_ref                         (Tc, Bb, Fp) f32   streamed input chunk
      [wih_l (inP,Gp) bf16, whh_l (H,Gp) bf16, b_l (1,Gp) f32] * num_layers
      wout (H,Op) bf16, bout (1,Op) f32
      o_ref (Bb, Op) f32
      gx_scr  (Tc*Bb, Gp) f32   hoisted input-gate projection (this chunk)
      seq_scr (Tc*Bb, H)  f32   layer-to-layer hidden sequence (this chunk)
      h_scr, c_scr (num_layers, Bb, H) f32  recurrent state carried over chunks
    PyTorch gate order i, f, g, o; gate g occupies lanes [g*H, (g+1)*H).
    """

    def kernel(*refs):
        x_ref = refs[0]
        layer_refs = refs[1:1 + 3 * num_layers]
        (wout_ref, bout_ref, o_ref,
         gx_scr, seq_scr, h_scr, c_scr) = refs[1 + 3 * num_layers:]

        t = pl.program_id(1)          # time-chunk index (inner, "arbitrary")

        @pl.when(t == 0)
        def _():
            h_scr[...] = jnp.zeros_like(h_scr)
            c_scr[...] = jnp.zeros_like(c_scr)

        h_top = None
        for l in range(num_layers):
            wih = layer_refs[3 * l][...]        # (inP, Gp) bf16
            whh = layer_refs[3 * l + 1][...]    # (H, Gp)   bf16, hoisted
            bias = layer_refs[3 * l + 2][...]   # (1, Gp)   f32

            # Hoisted input projection for the whole chunk: one lane-dense MXU
            # matmul (bf16 operands, f32 accumulate), bias folded in once.
            if l == 0:
                src = x_ref[...].reshape(Tc * Bb, Fp).astype(jnp.bfloat16)
            else:
                src = seq_scr[...].astype(jnp.bfloat16)
            gx_scr[...] = (
                jnp.dot(src, wih, preferred_element_type=jnp.float32) + bias)

            write_seq = (l != num_layers - 1)

            def step(s, carry, whh=whh, write_seq=write_seq):
                h, c = carry
                row = pl.multiple_of(s * Bb, Bb)
                gates = gx_scr[pl.ds(row, Bb), :] + jnp.dot(
                    h.astype(jnp.bfloat16), whh,
                    preferred_element_type=jnp.float32)          # (Bb, Gp)
                i_g = jax.nn.sigmoid(gates[:, 0:H])
                f_g = jax.nn.sigmoid(gates[:, H:2 * H])
                g_g = jnp.tanh(gates[:, 2 * H:3 * H])
                o_g = jax.nn.sigmoid(gates[:, 3 * H:4 * H])
                c_new = f_g * c + i_g * g_g
                h_new = o_g * jnp.tanh(c_new)
                if mask_tail:
                    # Ragged last chunk: freeze state on padded timesteps.
                    valid = (t * Tc + s) < T
                    h_new = jnp.where(valid, h_new, h)
                    c_new = jnp.where(valid, c_new, c)
                if write_seq:   # last layer only needs h_last downstream
                    seq_scr[pl.ds(row, Bb), :] = h_new
                return (h_new, c_new)

            hT, cT = lax.fori_loop(0, Tc, step, (h_scr[l], c_scr[l]),
                                   unroll=unroll)
            h_scr[l] = hT
            c_scr[l] = cT
            h_top = hT

        # Fused output heads, emitted once at the last time chunk.
        @pl.when(t == nt - 1)
        def _():
            o_ref[...] = (
                jnp.dot(h_top.astype(jnp.bfloat16), wout_ref[...],
                        preferred_element_type=jnp.float32)
                + bout_ref[...])

    return kernel


# ---------------------------------------------------------------------------
# One-time parameter packing (compact gate layout, bf16 MXU operands)
# ---------------------------------------------------------------------------

def pack_params(params, *, input_size, hidden_size, num_layers,
                output_size, output_layer):
    H = hidden_size
    Gp = _round_up(4 * H, 128)       # compact gate packing (gate g -> [g*H,(g+1)*H))
    Fp = _round_up(input_size, 8)    # only sublane-align the feature dim

    layers = []
    for l in range(num_layers):
        w_ih, w_hh, b_ih, b_hh = params["lstm"][l]
        in_l = input_size if l == 0 else H
        in_p = Fp if l == 0 else H
        wih_p = jnp.zeros((in_p, Gp), jnp.float32).at[:in_l, :4 * H].set(
            jnp.transpose(w_ih).astype(jnp.float32))
        whh_p = jnp.zeros((H, Gp), jnp.float32).at[:, :4 * H].set(
            jnp.transpose(w_hh).astype(jnp.float32))
        b_p = jnp.zeros((1, Gp), jnp.float32).at[0, :4 * H].set(
            (b_ih + b_hh).astype(jnp.float32))
        layers.append((wih_p.astype(jnp.bfloat16),
                       whh_p.astype(jnp.bfloat16), b_p))

    O = output_layer * output_size
    Op = _round_up(O, 128)
    wout_p = jnp.zeros((H, Op), jnp.float32)
    bout_p = jnp.zeros((1, Op), jnp.float32)
    for j, (w, b) in enumerate(params["out"]):
        wout_p = wout_p.at[:, j * output_size:(j + 1) * output_size].set(
            jnp.transpose(w).astype(jnp.float32))
        bout_p = bout_p.at[0, j * output_size:(j + 1) * output_size].set(
            b.astype(jnp.float32))

    return {"layers": layers,
            "head": (wout_p.astype(jnp.bfloat16), bout_p),
            "dims": {"H": H, "Gp": Gp, "Fp": Fp, "Op": Op, "O": O}}


# ---------------------------------------------------------------------------
# Forward wrapper
# ---------------------------------------------------------------------------

def lstm_forward(x, packed, *, hidden_size, num_layers, output_size,
                 output_layer, t_chunk=16, batch_block=64):
    """x: (B, T, input_size) float32 -> (B, output_size, output_layer)."""
    B, T, F = x.shape
    d = packed["dims"]
    H, Gp, Fp, Op, O = d["H"], d["Gp"], d["Fp"], d["Op"], d["O"]

    batch_block = _round_up(batch_block, 8)
    Bb = min(_round_up(B, 8), batch_block)   # batch tile (sublane multiple)
    Bp = _round_up(B, Bb)
    nb = Bp // Bb

    Tc = max(1, min(T, t_chunk))             # timesteps per chunk
    nt = -(-T // Tc)
    Tp = nt * Tc
    mask_tail = (Tp != T)

    # Time-major, padded (time to chunk multiple, batch to block multiple,
    # features to a sublane multiple only — no 128-lane host pad of x).
    xt = jnp.transpose(x.astype(jnp.float32), (1, 0, 2))        # (T, B, F)
    xt = jnp.pad(xt, ((0, Tp - T), (0, Bp - B), (0, Fp - F)))   # (Tp, Bp, Fp)

    inputs = [xt]
    in_specs = [pl.BlockSpec((Tc, Bb, Fp), lambda bb, tt: (tt, bb, 0))]
    for (wih_p, whh_p, b_p) in packed["layers"]:
        for w in (wih_p, whh_p, b_p):
            inputs.append(w)
            in_specs.append(pl.BlockSpec(w.shape, lambda bb, tt: (0, 0)))
    wout_p, bout_p = packed["head"]
    for w in (wout_p, bout_p):
        inputs.append(w)
        in_specs.append(pl.BlockSpec(w.shape, lambda bb, tt: (0, 0)))

    out_specs = pl.BlockSpec((Bb, Op), lambda bb, tt: (bb, 0))

    scratch = [
        pltpu.VMEM((Tc * Bb, Gp), jnp.float32),        # per-chunk input gates
        pltpu.VMEM((Tc * Bb, H), jnp.float32),         # per-chunk hidden sequence
        pltpu.VMEM((num_layers, Bb, H), jnp.float32),  # h carry (across chunks)
        pltpu.VMEM((num_layers, Bb, H), jnp.float32),  # c carry (across chunks)
    ]

    # Explicit VMEM budget: double-buffered inputs/outputs + scratches + headroom.
    est = 2 * Tc * Bb * Fp * 4
    for w in inputs[1:]:
        est += 2 * w.size * w.dtype.itemsize
    est += 2 * Bb * Op * 4
    est += (Tc * Bb * Gp + Tc * Bb * H + 2 * num_layers * Bb * H) * 4
    vmem_limit = int(min(64 << 20, max(32 << 20, 2 * est + (4 << 20))))

    # TODO(synk): sweep unroll in {2,4,8} at large Bb and check vreg spill.
    unroll = True if Tc <= 8 else 4

    kernel = _make_kernel(num_layers, T, Tc, nt, Bb, Fp, H, Gp, unroll, mask_tail)

    out_p = pl.pallas_call(
        kernel,
        out_shape=jax.ShapeDtypeStruct((Bp, Op), jnp.float32),
        grid_spec=pltpu.PrefetchScalarGridSpec(
            num_scalar_prefetch=0,
            grid=(nb, nt),                    # batch blocks (outer) x time chunks
            in_specs=in_specs,
            out_specs=out_specs,
            scratch_shapes=scratch),
        compiler_params=pltpu.CompilerParams(
            dimension_semantics=("parallel", "arbitrary"),
            vmem_limit_bytes=vmem_limit),
    )(*inputs)

    # torch cat([head_j(h_last)], dim=1).view(B, output_size, output_layer)
    return out_p[:B, :O].reshape(B, output_size, output_layer)


# ---------------------------------------------------------------------------
# Pure-JAX f32 reference (PyTorch-faithful, for correctness check)
# ---------------------------------------------------------------------------

def lstm_forward_ref(x, params, *, hidden_size, num_layers, output_size,
                     output_layer):
    B, T, _ = x.shape
    H = hidden_size
    seq = jnp.transpose(x.astype(jnp.float32), (1, 0, 2))       # (T, B, F)
    for l in range(num_layers):
        w_ih, w_hh, b_ih, b_hh = params["lstm"][l]
        h = jnp.zeros((B, H), jnp.float32)
        c = jnp.zeros((B, H), jnp.float32)
        outs = []
        for t in range(T):
            gates = seq[t] @ w_ih.T + h @ w_hh.T + b_ih + b_hh
            i_g = jax.nn.sigmoid(gates[:, 0:H])
            f_g = jax.nn.sigmoid(gates[:, H:2 * H])
            g_g = jnp.tanh(gates[:, 2 * H:3 * H])
            o_g = jax.nn.sigmoid(gates[:, 3 * H:4 * H])
            c = f_g * c + i_g * g_g
            h = o_g * jnp.tanh(c)
            outs.append(h)
        seq = jnp.stack(outs)
    h_last = seq[-1]
    heads = [h_last @ w.T + b for (w, b) in params["out"]]
    out = jnp.concatenate(heads, axis=1)
    return out.reshape(B, output_size, output_layer)


# ---------------------------------------------------------------------------
# Deterministic parameter construction (PyTorch default init U(-1/sqrt(H), 1/sqrt(H)))
# ---------------------------------------------------------------------------

def init_params(key, input_size, hidden_size, num_layers, output_size, output_layer):
    bound = 1.0 / math.sqrt(hidden_size)
    params = {"lstm": [], "out": []}
    for l in range(num_layers):
        in_l = input_size if l == 0 else hidden_size
        key, k1, k2, k3, k4 = jax.random.split(key, 5)
        w_ih = jax.random.uniform(k1, (4 * hidden_size, in_l), jnp.float32, -bound, bound)
        w_hh = jax.random.uniform(k2, (4 * hidden_size, hidden_size), jnp.float32, -bound, bound)
        b_ih = jax.random.uniform(k3, (4 * hidden_size,), jnp.float32, -bound, bound)
        b_hh = jax.random.uniform(k4, (4 * hidden_size,), jnp.float32, -bound, bound)
        params["lstm"].append((w_ih, w_hh, b_ih, b_hh))
    for _ in range(output_layer):
        key, k1, k2 = jax.random.split(key, 3)
        w = jax.random.uniform(k1, (output_size, hidden_size), jnp.float32, -bound, bound)
        b = jax.random.uniform(k2, (output_size,), jnp.float32, -bound, bound)
        params["out"].append((w, b))
    return params


# ---------------------------------------------------------------------------
# Demo
# ---------------------------------------------------------------------------

if __name__ == "__main__":
    input_size = 4
    hidden_size = 32
    num_layers = 2
    output_size = 2
    output_layer = 3
    batch = 2
    seq_len = 8

    key = jax.random.PRNGKey(0)
    key, kx = jax.random.split(key)
    x = jax.random.normal(kx, (batch, seq_len, input_size), dtype=jnp.float32)

    params = init_params(key, input_size, hidden_size, num_layers,
                         output_size, output_layer)
    packed = pack_params(params, input_size=input_size, hidden_size=hidden_size,
                         num_layers=num_layers, output_size=output_size,
                         output_layer=output_layer)

    common = dict(hidden_size=hidden_size, num_layers=num_layers,
                  output_size=output_size, output_layer=output_layer)

    # Multi-chunk path with a ragged last chunk (T=8, Tc=3 -> chunks 3+3+2).
    out = jax.block_until_ready(lstm_forward(x, packed, t_chunk=3, **common))
    assert out.shape == (batch, output_size, output_layer), out.shape
    assert out.dtype == jnp.float32

    # Single-chunk path (whole sequence in one chunk) must agree with it.
    out_one = jax.block_until_ready(lstm_forward(x, packed, t_chunk=16, **common))
    assert jnp.allclose(out, out_one, rtol=1e-3, atol=1e-3), (
        float(jnp.max(jnp.abs(out - out_one))))

    # f32 PyTorch-faithful reference (kernel uses bf16 MXU operands -> loose tol).
    ref = jax.block_until_ready(lstm_forward_ref(x, params, **common))
    err = float(jnp.max(jnp.abs(out - ref)))
    assert jnp.allclose(out, ref, rtol=5e-2, atol=5e-2), f"max abs err {err}"

    print("KERNEL_OK")
</pallas_src>

<mosaic_0001>
module attributes {stable_mosaic.version = 11 : i64} {
  func.func @kernel(%arg0: i32, %arg1: i32, %arg2: memref<3x8x8xf32, #tpu.memory_space<vmem>>, %arg3: memref<8x128xbf16, #tpu.memory_space<vmem>>, %arg4: memref<32x128xbf16, #tpu.memory_space<vmem>>, %arg5: memref<1x128xf32, #tpu.memory_space<vmem>>, %arg6: memref<32x128xbf16, #tpu.memory_space<vmem>>, %arg7: memref<32x128xbf16, #tpu.memory_space<vmem>>, %arg8: memref<1x128xf32, #tpu.memory_space<vmem>>, %arg9: memref<32x128xbf16, #tpu.memory_space<vmem>>, %arg10: memref<1x128xf32, #tpu.memory_space<vmem>>, %arg11: memref<8x128xf32, #tpu.memory_space<vmem>>, %arg12: memref<24x128xf32, #tpu.memory_space<vmem>>, %arg13: memref<24x32xf32, #tpu.memory_space<vmem>>, %arg14: memref<2x8x32xf32, #tpu.memory_space<vmem>>, %arg15: memref<2x8x32xf32, #tpu.memory_space<vmem>>) attributes {dimension_semantics = [#tpu.dimension_semantics<parallel>, #tpu.dimension_semantics<arbitrary>], iteration_bounds = array<i64: 1, 3>, scalar_prefetch = 0 : i64, scratch_operands = 4 : i64, tpu.core_type = #tpu.core_type<tc>, window_params = [{transform_indices = @transform_0, window_bounds = array<i64: 3, 8, 8>}, {pipeline_mode = #tpu.pipeline_mode<synchronous>, transform_indices = @transform_1, window_bounds = array<i64: 8, 128>}, {pipeline_mode = #tpu.pipeline_mode<synchronous>, transform_indices = @transform_2, window_bounds = array<i64: 32, 128>}, {pipeline_mode = #tpu.pipeline_mode<synchronous>, transform_indices = @transform_3, window_bounds = array<i64: 1, 128>}, {pipeline_mode = #tpu.pipeline_mode<synchronous>, transform_indices = @transform_4, window_bounds = array<i64: 32, 128>}, {pipeline_mode = #tpu.pipeline_mode<synchronous>, transform_indices = @transform_5, window_bounds = array<i64: 32, 128>}, {pipeline_mode = #tpu.pipeline_mode<synchronous>, transform_indices = @transform_6, window_bounds = array<i64: 1, 128>}, {pipeline_mode = #tpu.pipeline_mode<synchronous>, transform_indices = @transform_7, window_bounds = array<i64: 32, 128>}, {pipeline_mode = #tpu.pipeline_mode<synchronous>, transform_indices = @transform_8, window_bounds = array<i64: 1, 128>}, {transform_indices = @transform_9, window_bounds = array<i64: 8, 128>}]} {
    %c0_i32 = arith.constant 0 : i32
    %0 = arith.cmpi eq, %arg1, %c0_i32 : i32
    %1 = arith.extui %0 : i1 to i32
    %c0_i32_0 = arith.constant 0 : i32
    %2 = arith.cmpi ne, %1, %c0_i32_0 : i32
    scf.if %2 {
      %cst_102 = arith.constant 0.000000e+00 : f32
      %273 = vector.broadcast %cst_102 : f32 to vector<2x8x32xf32>
      %c0_103 = arith.constant 0 : index
      %c0_104 = arith.constant 0 : index
      %c0_105 = arith.constant 0 : index
      %274 = vector.load %arg14[%c0_103, %c0_104, %c0_105] : memref<2x8x32xf32, #tpu.memory_space<vmem>>, vector<2x8x32xf32>
      tpu.vector_store %arg14[%c0_103, %c0_104, %c0_105], %273 {strides = array<i32>} : memref<2x8x32xf32, #tpu.memory_space<vmem>>, vector<2x8x32xf32>,
      %cst_106 = arith.constant 0.000000e+00 : f32
      %275 = vector.broadcast %cst_106 : f32 to vector<2x8x32xf32>
      %c0_107 = arith.constant 0 : index
      %c0_108 = arith.constant 0 : index
      %c0_109 = arith.constant 0 : index
      %276 = vector.load %arg15[%c0_107, %c0_108, %c0_109] : memref<2x8x32xf32, #tpu.memory_space<vmem>>, vector<2x8x32xf32>
      tpu.vector_store %arg15[%c0_107, %c0_108, %c0_109], %275 {strides = array<i32>} : memref<2x8x32xf32, #tpu.memory_space<vmem>>, vector<2x8x32xf32>,
    } else {
    }
    %c0 = arith.constant 0 : index
    %c0_1 = arith.constant 0 : index
    %3 = vector.load %arg3[%c0, %c0_1] : memref<8x128xbf16, #tpu.memory_space<vmem>>, vector<8x128xbf16>
    %c0_2 = arith.constant 0 : index
    %c0_3 = arith.constant 0 : index
    %4 = vector.load %arg4[%c0_2, %c0_3] : memref<32x128xbf16, #tpu.memory_space<vmem>>, vector<32x128xbf16>
    %c0_4 = arith.constant 0 : index
    %c0_5 = arith.constant 0 : index
    %5 = vector.load %arg5[%c0_4, %c0_5] : memref<1x128xf32, #tpu.memory_space<vmem>>, vector<1x128xf32>
    %c0_6 = arith.constant 0 : index
    %c0_7 = arith.constant 0 : index
    %c0_8 = arith.constant 0 : index
    %6 = vector.load %arg2[%c0_6, %c0_7, %c0_8] : memref<3x8x8xf32, #tpu.memory_space<vmem>>, vector<3x8x8xf32>
    %7 = vector.shape_cast %6 : vector<3x8x8xf32> to vector<24x8xf32>
    %8 = arith.truncf %7 : vector<24x8xf32> to vector<24x8xbf16>
    %cst = arith.constant dense<0.000000e+00> : vector<24x128xf32>
    %9 = tpu.matmul %8, %3, %cst {dimension_numbers = #tpu.dot_dimension_numbers<[1], [0], [0], [1], [0, 0, 1, 1], [], []>} : vector<24x8xbf16>, vector<8x128xbf16>, vector<24x128xf32> -> vector<24x128xf32>
    %10 = vector.broadcast %5 : vector<1x128xf32> to vector<24x128xf32>
    %11 = arith.addf %9, %10 : vector<24x128xf32>
    %c0_9 = arith.constant 0 : index
    %c0_10 = arith.constant 0 : index
    %12 = vector.load %arg12[%c0_9, %c0_10] : memref<24x128xf32, #tpu.memory_space<vmem>>, vector<24x128xf32>
    tpu.vector_store %arg12[%c0_9, %c0_10], %11 {strides = array<i32>} : memref<24x128xf32, #tpu.memory_space<vmem>>, vector<24x128xf32>,
    %c0_11 = arith.constant 0 : index
    %c0_12 = arith.constant 0 : index
    %c0_13 = arith.constant 0 : index
    %13 = vector.load %arg14[%c0_11, %c0_12, %c0_13] : memref<2x8x32xf32, #tpu.memory_space<vmem>>, vector<1x8x32xf32>
    %14 = vector.shape_cast %13 : vector<1x8x32xf32> to vector<8x32xf32>
    %c0_14 = arith.constant 0 : index
    %c0_15 = arith.constant 0 : index
    %c0_16 = arith.constant 0 : index
    %15 = vector.load %arg15[%c0_14, %c0_15, %c0_16] : memref<2x8x32xf32, #tpu.memory_space<vmem>>, vector<1x8x32xf32>
    %16 = vector.shape_cast %15 : vector<1x8x32xf32> to vector<8x32xf32>
    %c0_i32_17 = arith.constant 0 : i32
    %c8_i32 = arith.constant 8 : i32
    %17 = arith.muli %c0_i32_17, %c8_i32 : i32
    %18 = tpu.assume_multiple %17, 8 : i32
    %19 = arith.index_cast %18 : i32 to index
    %c0_18 = arith.constant 0 : index
    %20 = vector.load %arg12[%19, %c0_18] : memref<24x128xf32, #tpu.memory_space<vmem>>, vector<8x128xf32>
    %21 = arith.truncf %14 : vector<8x32xf32> to vector<8x32xbf16>
    %cst_19 = arith.constant dense<0.000000e+00> : vector<8x128xf32>
    %22 = tpu.matmul %21, %4, %cst_19 {dimension_numbers = #tpu.dot_dimension_numbers<[1], [0], [0], [1], [0, 0, 1, 1], [], []>} : vector<8x32xbf16>, vector<32x128xbf16>, vector<8x128xf32> -> vector<8x128xf32>
    %23 = arith.addf %20, %22 : vector<8x128xf32>
    %24 = vector.extract_strided_slice %23 {offsets = [0, 0], sizes = [8, 32], strides = [1, 1]} : vector<8x128xf32> to vector<8x32xf32>
    %25 = arith.negf %24 : vector<8x32xf32>
    %26 = math.exp %25 : vector<8x32xf32>
    %cst_20 = arith.constant 1.000000e+00 : f32
    %27 = vector.broadcast %cst_20 : f32 to vector<8x32xf32>
    %28 = arith.addf %27, %26 : vector<8x32xf32>
    %29 = arith.divf %27, %28 : vector<8x32xf32>
    %30 = vector.extract_strided_slice %23 {offsets = [0, 32], sizes = [8, 32], strides = [1, 1]} : vector<8x128xf32> to vector<8x32xf32>
    %31 = arith.negf %30 : vector<8x32xf32>
    %32 = math.exp %31 : vector<8x32xf32>
    %cst_21 = arith.constant 1.000000e+00 : f32
    %33 = vector.broadcast %cst_21 : f32 to vector<8x32xf32>
    %34 = arith.addf %33, %32 : vector<8x32xf32>
    %35 = arith.divf %33, %34 : vector<8x32xf32>
    %36 = vector.extract_strided_slice %23 {offsets = [0, 64], sizes = [8, 32], strides = [1, 1]} : vector<8x128xf32> to vector<8x32xf32>
    %37 = math.tanh %36 : vector<8x32xf32>
    %38 = vector.extract_strided_slice %23 {offsets = [0, 96], sizes = [8, 32], strides = [1, 1]} : vector<8x128xf32> to vector<8x32xf32>
    %39 = arith.negf %38 : vector<8x32xf32>
    %40 = math.exp %39 : vector<8x32xf32>
    %cst_22 = arith.constant 1.000000e+00 : f32
    %41 = vector.broadcast %cst_22 : f32 to vector<8x32xf32>
    %42 = arith.addf %41, %40 : vector<8x32xf32>
    %43 = arith.divf %41, %42 : vector<8x32xf32>
    %44 = arith.mulf %35, %16 : vector<8x32xf32>
    %45 = arith.mulf %29, %37 : vector<8x32xf32>
    %46 = arith.addf %44, %45 : vector<8x32xf32>
    %47 = math.tanh %46 : vector<8x32xf32>
    %48 = arith.mulf %43, %47 : vector<8x32xf32>
    %c3_i32 = arith.constant 3 : i32
    %49 = arith.muli %arg1, %c3_i32 : i32
    %50 = arith.addi %49, %c0_i32_17 : i32
    %c8_i32_23 = arith.constant 8 : i32
    %51 = arith.cmpi slt, %50, %c8_i32_23 : i32
    %52 = arith.select %51, %48, %14 : vector<8x32xf32>
    %53 = arith.select %51, %46, %16 : vector<8x32xf32>
    %54 = arith.index_cast %18 : i32 to index
    %c0_24 = arith.constant 0 : index
    %55 = vector.load %arg13[%54, %c0_24] : memref<24x32xf32, #tpu.memory_space<vmem>>, vector<8x32xf32>
    tpu.vector_store %arg13[%54, %c0_24], %52 {strides = array<i32>} : memref<24x32xf32, #tpu.memory_space<vmem>>, vector<8x32xf32>,
    %c1_i32 = arith.constant 1 : i32
    %c8_i32_25 = arith.constant 8 : i32
    %56 = arith.muli %c1_i32, %c8_i32_25 : i32
    %57 = tpu.assume_multiple %56, 8 : i32
    %58 = arith.index_cast %57 : i32 to index
    %c0_26 = arith.constant 0 : index
    %59 = vector.load %arg12[%58, %c0_26] : memref<24x128xf32, #tpu.memory_space<vmem>>, vector<8x128xf32>
    %60 = arith.truncf %52 : vector<8x32xf32> to vector<8x32xbf16>
    %cst_27 = arith.constant dense<0.000000e+00> : vector<8x128xf32>
    %61 = tpu.matmul %60, %4, %cst_27 {dimension_numbers = #tpu.dot_dimension_numbers<[1], [0], [0], [1], [0, 0, 1, 1], [], []>} : vector<8x32xbf16>, vector<32x128xbf16>, vector<8x128xf32> -> vector<8x128xf32>
    %62 = arith.addf %59, %61 : vector<8x128xf32>
    %63 = vector.extract_strided_slice %62 {offsets = [0, 0], sizes = [8, 32], strides = [1, 1]} : vector<8x128xf32> to vector<8x32xf32>
    %64 = arith.negf %63 : vector<8x32xf32>
    %65 = math.exp %64 : vector<8x32xf32>
    %cst_28 = arith.constant 1.000000e+00 : f32
    %66 = vector.broadcast %cst_28 : f32 to vector<8x32xf32>
    %67 = arith.addf %66, %65 : vector<8x32xf32>
    %68 = arith.divf %66, %67 : vector<8x32xf32>
    %69 = vector.extract_strided_slice %62 {offsets = [0, 32], sizes = [8, 32], strides = [1, 1]} : vector<8x128xf32> to vector<8x32xf32>
    %70 = arith.negf %69 : vector<8x32xf32>
    %71 = math.exp %70 : vector<8x32xf32>
    %cst_29 = arith.constant 1.000000e+00 : f32
    %72 = vector.broadcast %cst_29 : f32 to vector<8x32xf32>
    %73 = arith.addf %72, %71 : vector<8x32xf32>
    %74 = arith.divf %72, %73 : vector<8x32xf32>
    %75 = vector.extract_strided_slice %62 {offsets = [0, 64], sizes = [8, 32], strides = [1, 1]} : vector<8x128xf32> to vector<8x32xf32>
    %76 = math.tanh %75 : vector<8x32xf32>
    %77 = vector.extract_strided_slice %62 {offsets = [0, 96], sizes = [8, 32], strides = [1, 1]} : vector<8x128xf32> to vector<8x32xf32>
    %78 = arith.negf %77 : vector<8x32xf32>
    %79 = math.exp %78 : vector<8x32xf32>
    %cst_30 = arith.constant 1.000000e+00 : f32
    %80 = vector.broadcast %cst_30 : f32 to vector<8x32xf32>
    %81 = arith.addf %80, %79 : vector<8x32xf32>
    %82 = arith.divf %80, %81 : vector<8x32xf32>
    %83 = arith.mulf %74, %53 : vector<8x32xf32>
    %84 = arith.mulf %68, %76 : vector<8x32xf32>
    %85 = arith.addf %83, %84 : vector<8x32xf32>
    %86 = math.tanh %85 : vector<8x32xf32>
    %87 = arith.mulf %82, %86 : vector<8x32xf32>
    %c3_i32_31 = arith.constant 3 : i32
    %88 = arith.muli %arg1, %c3_i32_31 : i32
    %89 = arith.addi %88, %c1_i32 : i32
    %c8_i32_32 = arith.constant 8 : i32
    %90 = arith.cmpi slt, %89, %c8_i32_32 : i32
    %91 = arith.select %90, %87, %52 : vector<8x32xf32>
    %92 = arith.select %90, %85, %53 : vector<8x32xf32>
    %93 = arith.index_cast %57 : i32 to index
    %c0_33 = arith.constant 0 : index
    %94 = vector.load %arg13[%93, %c0_33] : memref<24x32xf32, #tpu.memory_space<vmem>>, vector<8x32xf32>
    tpu.vector_store %arg13[%93, %c0_33], %91 {strides = array<i32>} : memref<24x32xf32, #tpu.memory_space<vmem>>, vector<8x32xf32>,
    %c2_i32 = arith.constant 2 : i32
    %c8_i32_34 = arith.constant 8 : i32
    %95 = arith.muli %c2_i32, %c8_i32_34 : i32
    %96 = tpu.assume_multiple %95, 8 : i32
    %97 = arith.index_cast %96 : i32 to index
    %c0_35 = arith.constant 0 : index
    %98 = vector.load %arg12[%97, %c0_35] : memref<24x128xf32, #tpu.memory_space<vmem>>, vector<8x128xf32>
    %99 = arith.truncf %91 : vector<8x32xf32> to vector<8x32xbf16>
    %cst_36 = arith.constant dense<0.000000e+00> : vector<8x128xf32>
    %100 = tpu.matmul %99, %4, %cst_36 {dimension_numbers = #tpu.dot_dimension_numbers<[1], [0], [0], [1], [0, 0, 1, 1], [], []>} : vector<8x32xbf16>, vector<32x128xbf16>, vector<8x128xf32> -> vector<8x128xf32>
    %101 = arith.addf %98, %100 : vector<8x128xf32>
    %102 = vector.extract_strided_slice %101 {offsets = [0, 0], sizes = [8, 32], strides = [1, 1]} : vector<8x128xf32> to vector<8x32xf32>
    %103 = arith.negf %102 : vector<8x32xf32>
    %104 = math.exp %103 : vector<8x32xf32>
    %cst_37 = arith.constant 1.000000e+00 : f32
    %105 = vector.broadcast %cst_37 : f32 to vector<8x32xf32>
    %106 = arith.addf %105, %104 : vector<8x32xf32>
    %107 = arith.divf %105, %106 : vector<8x32xf32>
    %108 = vector.extract_strided_slice %101 {offsets = [0, 32], sizes = [8, 32], strides = [1, 1]} : vector<8x128xf32> to vector<8x32xf32>
    %109 = arith.negf %108 : vector<8x32xf32>
    %110 = math.exp %109 : vector<8x32xf32>
    %cst_38 = arith.constant 1.000000e+00 : f32
    %111 = vector.broadcast %cst_38 : f32 to vector<8x32xf32>
    %112 = arith.addf %111, %110 : vector<8x32xf32>
    %113 = arith.divf %111, %112 : vector<8x32xf32>
    %114 = vector.extract_strided_slice %101 {offsets = [0, 64], sizes = [8, 32], strides = [1, 1]} : vector<8x128xf32> to vector<8x32xf32>
    %115 = math.tanh %114 : vector<8x32xf32>
    %116 = vector.extract_strided_slice %101 {offsets = [0, 96], sizes = [8, 32], strides = [1, 1]} : vector<8x128xf32> to vector<8x32xf32>
    %117 = arith.negf %116 : vector<8x32xf32>
    %118 = math.exp %117 : vector<8x32xf32>
    %cst_39 = arith.constant 1.000000e+00 : f32
    %119 = vector.broadcast %cst_39 : f32 to vector<8x32xf32>
    %120 = arith.addf %119, %118 : vector<8x32xf32>
    %121 = arith.divf %119, %120 : vector<8x32xf32>
    %122 = arith.mulf %113, %92 : vector<8x32xf32>
    %123 = arith.mulf %107, %115 : vector<8x32xf32>
    %124 = arith.addf %122, %123 : vector<8x32xf32>
    %125 = math.tanh %124 : vector<8x32xf32>
    %126 = arith.mulf %121, %125 : vector<8x32xf32>
    %c3_i32_40 = arith.constant 3 : i32
    %127 = arith.muli %arg1, %c3_i32_40 : i32
    %128 = arith.addi %127, %c2_i32 : i32
    %c8_i32_41 = arith.constant 8 : i32
    %129 = arith.cmpi slt, %128, %c8_i32_41 : i32
    %130 = arith.select %129, %126, %91 : vector<8x32xf32>
    %131 = arith.select %129, %124, %92 : vector<8x32xf32>
    %132 = arith.index_cast %96 : i32 to index
    %c0_42 = arith.constant 0 : index
    %133 = vector.load %arg13[%132, %c0_42] : memref<24x32xf32, #tpu.memory_space<vmem>>, vector<8x32xf32>
    tpu.vector_store %arg13[%132, %c0_42], %130 {strides = array<i32>} : memref<24x32xf32, #tpu.memory_space<vmem>>, vector<8x32xf32>,
    %c3_i32_43 = arith.constant 3 : i32
    %c0_44 = arith.constant 0 : index
    %c0_45 = arith.constant 0 : index
    %c0_46 = arith.constant 0 : index
    %134 = vector.load %arg14[%c0_44, %c0_45, %c0_46] : memref<2x8x32xf32, #tpu.memory_space<vmem>>, vector<1x8x32xf32>
    %135 = vector.shape_cast %134 : vector<1x8x32xf32> to vector<8x32xf32>
    %136 = vector.shape_cast %130 : vector<8x32xf32> to vector<1x8x32xf32>
    tpu.vector_store %arg14[%c0_44, %c0_45, %c0_46], %136 {strides = array<i32>} : memref<2x8x32xf32, #tpu.memory_space<vmem>>, vector<1x8x32xf32>,
    %c0_47 = arith.constant 0 : index
    %c0_48 = arith.constant 0 : index
    %c0_49 = arith.constant 0 : index
    %137 = vector.load %arg15[%c0_47, %c0_48, %c0_49] : memref<2x8x32xf32, #tpu.memory_space<vmem>>, vector<1x8x32xf32>
    %138 = vector.shape_cast %137 : vector<1x8x32xf32> to vector<8x32xf32>
    %139 = vector.shape_cast %131 : vector<8x32xf32> to vector<1x8x32xf32>
    tpu.vector_store %arg15[%c0_47, %c0_48, %c0_49], %139 {strides = array<i32>} : memref<2x8x32xf32, #tpu.memory_space<vmem>>, vector<1x8x32xf32>,
    %c0_50 = arith.constant 0 : index
    %c0_51 = arith.constant 0 : index
    %140 = vector.load %arg6[%c0_50, %c0_51] : memref<32x128xbf16, #tpu.memory_space<vmem>>, vector<32x128xbf16>
    %c0_52 = arith.constant 0 : index
    %c0_53 = arith.constant 0 : index
    %141 = vector.load %arg7[%c0_52, %c0_53] : memref<32x128xbf16, #tpu.memory_space<vmem>>, vector<32x128xbf16>
    %c0_54 = arith.constant 0 : index
    %c0_55 = arith.constant 0 : index
    %142 = vector.load %arg8[%c0_54, %c0_55] : memref<1x128xf32, #tpu.memory_space<vmem>>, vector<1x128xf32>
    %c0_56 = arith.constant 0 : index
    %c0_57 = arith.constant 0 : index
    %143 = vector.load %arg13[%c0_56, %c0_57] : memref<24x32xf32, #tpu.memory_space<vmem>>, vector<24x32xf32>
    %144 = arith.truncf %143 : vector<24x32xf32> to vector<24x32xbf16>
    %cst_58 = arith.constant dense<0.000000e+00> : vector<24x128xf32>
    %145 = tpu.matmul %144, %140, %cst_58 {dimension_numbers = #tpu.dot_dimension_numbers<[1], [0], [0], [1], [0, 0, 1, 1], [], []>} : vector<24x32xbf16>, vector<32x128xbf16>, vector<24x128xf32> -> vector<24x128xf32>
    %146 = vector.broadcast %142 : vector<1x128xf32> to vector<24x128xf32>
    %147 = arith.addf %145, %146 : vector<24x128xf32>
    %c0_59 = arith.constant 0 : index
    %c0_60 = arith.constant 0 : index
    %148 = vector.load %arg12[%c0_59, %c0_60] : memref<24x128xf32, #tpu.memory_space<vmem>>, vector<24x128xf32>
    tpu.vector_store %arg12[%c0_59, %c0_60], %147 {strides = array<i32>} : memref<24x128xf32, #tpu.memory_space<vmem>>, vector<24x128xf32>,
    %c1 = arith.constant 1 : index
    %c0_61 = arith.constant 0 : index
    %c0_62 = arith.constant 0 : index
    %149 = vector.load %arg14[%c1, %c0_61, %c0_62] : memref<2x8x32xf32, #tpu.memory_space<vmem>>, vector<1x8x32xf32>
    %150 = vector.shape_cast %149 : vector<1x8x32xf32> to vector<8x32xf32>
    %c1_63 = arith.constant 1 : index
    %c0_64 = arith.constant 0 : index
    %c0_65 = arith.constant 0 : index
    %151 = vector.load %arg15[%c1_63, %c0_64, %c0_65] : memref<2x8x32xf32, #tpu.memory_space<vmem>>, vector<1x8x32xf32>
    %152 = vector.shape_cast %151 : vector<1x8x32xf32> to vector<8x32xf32>
    %c0_i32_66 = arith.constant 0 : i32
    %c8_i32_67 = arith.constant 8 : i32
    %153 = arith.muli %c0_i32_66, %c8_i32_67 : i32
    %154 = tpu.assume_multiple %153, 8 : i32
    %155 = arith.index_cast %154 : i32 to index
    %c0_68 = arith.constant 0 : index
    %156 = vector.load %arg12[%155, %c0_68] : memref<24x128xf32, #tpu.memory_space<vmem>>, vector<8x128xf32>
    %157 = arith.truncf %150 : vector<8x32xf32> to vector<8x32xbf16>
    %cst_69 = arith.constant dense<0.000000e+00> : vector<8x128xf32>
    %158 = tpu.matmul %157, %141, %cst_69 {dimension_numbers = #tpu.dot_dimension_numbers<[1], [0], [0], [1], [0, 0, 1, 1], [], []>} : vector<8x32xbf16>, vector<32x128xbf16>, vector<8x128xf32> -> vector<8x128xf32>
    %159 = arith.addf %156, %158 : vector<8x128xf32>
    %160 = vector.extract_strided_slice %159 {offsets = [0, 0], sizes = [8, 32], strides = [1, 1]} : vector<8x128xf32> to vector<8x32xf32>
    %161 = arith.negf %160 : vector<8x32xf32>
    %162 = math.exp %161 : vector<8x32xf32>
    %cst_70 = arith.constant 1.000000e+00 : f32
    %163 = vector.broadcast %cst_70 : f32 to vector<8x32xf32>
    %164 = arith.addf %163, %162 : vector<8x32xf32>
    %165 = arith.divf %163, %164 : vector<8x32xf32>
    %166 = vector.extract_strided_slice %159 {offsets = [0, 32], sizes = [8, 32], strides = [1, 1]} : vector<8x128xf32> to vector<8x32xf32>
    %167 = arith.negf %166 : vector<8x32xf32>
    %168 = math.exp %167 : vector<8x32xf32>
    %cst_71 = arith.constant 1.000000e+00 : f32
    %169 = vector.broadcast %cst_71 : f32 to vector<8x32xf32>
    %170 = arith.addf %169, %168 : vector<8x32xf32>
    %171 = arith.divf %169, %170 : vector<8x32xf32>
    %172 = vector.extract_strided_slice %159 {offsets = [0, 64], sizes = [8, 32], strides = [1, 1]} : vector<8x128xf32> to vector<8x32xf32>
    %173 = math.tanh %172 : vector<8x32xf32>
    %174 = vector.extract_strided_slice %159 {offsets = [0, 96], sizes = [8, 32], strides = [1, 1]} : vector<8x128xf32> to vector<8x32xf32>
    %175 = arith.negf %174 : vector<8x32xf32>
    %176 = math.exp %175 : vector<8x32xf32>
    %cst_72 = arith.constant 1.000000e+00 : f32
    %177 = vector.broadcast %cst_72 : f32 to vector<8x32xf32>
    %178 = arith.addf %177, %176 : vector<8x32xf32>
    %179 = arith.divf %177, %178 : vector<8x32xf32>
    %180 = arith.mulf %171, %152 : vector<8x32xf32>
    %181 = arith.mulf %165, %173 : vector<8x32xf32>
    %182 = arith.addf %180, %181 : vector<8x32xf32>
    %183 = math.tanh %182 : vector<8x32xf32>
    %184 = arith.mulf %179, %183 : vector<8x32xf32>
    %c3_i32_73 = arith.constant 3 : i32
    %185 = arith.muli %arg1, %c3_i32_73 : i32
    %186 = arith.addi %185, %c0_i32_66 : i32
    %c8_i32_74 = arith.constant 8 : i32
    %187 = arith.cmpi slt, %186, %c8_i32_74 : i32
    %188 = arith.select %187, %184, %150 : vector<8x32xf32>
    %189 = arith.select %187, %182, %152 : vector<8x32xf32>
    %c1_i32_75 = arith.constant 1 : i32
    %c8_i32_76 = arith.constant 8 : i32
    %190 = arith.muli %c1_i32_75, %c8_i32_76 : i32
    %191 = tpu.assume_multiple %190, 8 : i32
    %192 = arith.index_cast %191 : i32 to index
    %c0_77 = arith.constant 0 : index
    %193 = vector.load %arg12[%192, %c0_77] : memref<24x128xf32, #tpu.memory_space<vmem>>, vector<8x128xf32>
    %194 = arith.truncf %188 : vector<8x32xf32> to vector<8x32xbf16>
    %cst_78 = arith.constant dense<0.000000e+00> : vector<8x128xf32>
    %195 = tpu.matmul %194, %141, %cst_78 {dimension_numbers = #tpu.dot_dimension_numbers<[1], [0], [0], [1], [0, 0, 1, 1], [], []>} : vector<8x32xbf16>, vector<32x128xbf16>, vector<8x128xf32> -> vector<8x128xf32>
    %196 = arith.addf %193, %195 : vector<8x128xf32>
    %197 = vector.extract_strided_slice %196 {offsets = [0, 0], sizes = [8, 32], strides = [1, 1]} : vector<8x128xf32> to vector<8x32xf32>
    %198 = arith.negf %197 : vector<8x32xf32>
    %199 = math.exp %198 : vector<8x32xf32>
    %cst_79 = arith.constant 1.000000e+00 : f32
    %200 = vector.broadcast %cst_79 : f32 to vector<8x32xf32>
    %201 = arith.addf %200, %199 : vector<8x32xf32>
    %202 = arith.divf %200, %201 : vector<8x32xf32>
    %203 = vector.extract_strided_slice %196 {offsets = [0, 32], sizes = [8, 32], strides = [1, 1]} : vector<8x128xf32> to vector<8x32xf32>
    %204 = arith.negf %203 : vector<8x32xf32>
    %205 = math.exp %204 : vector<8x32xf32>
    %cst_80 = arith.constant 1.000000e+00 : f32
    %206 = vector.broadcast %cst_80 : f32 to vector<8x32xf32>
    %207 = arith.addf %206, %205 : vector<8x32xf32>
    %208 = arith.divf %206, %207 : vector<8x32xf32>
    %209 = vector.extract_strided_slice %196 {offsets = [0, 64], sizes = [8, 32], strides = [1, 1]} : vector<8x128xf32> to vector<8x32xf32>
    %210 = math.tanh %209 : vector<8x32xf32>
    %211 = vector.extract_strided_slice %196 {offsets = [0, 96], sizes = [8, 32], strides = [1, 1]} : vector<8x128xf32> to vector<8x32xf32>
    %212 = arith.negf %211 : vector<8x32xf32>
    %213 = math.exp %212 : vector<8x32xf32>
    %cst_81 = arith.constant 1.000000e+00 : f32
    %214 = vector.broadcast %cst_81 : f32 to vector<8x32xf32>
    %215 = arith.addf %214, %213 : vector<8x32xf32>
    %216 = arith.divf %214, %215 : vector<8x32xf32>
    %217 = arith.mulf %208, %189 : vector<8x32xf32>
    %218 = arith.mulf %202, %210 : vector<8x32xf32>
    %219 = arith.addf %217, %218 : vector<8x32xf32>
    %220 = math.tanh %219 : vector<8x32xf32>
    %221 = arith.mulf %216, %220 : vector<8x32xf32>
    %c3_i32_82 = arith.constant 3 : i32
    %222 = arith.muli %arg1, %c3_i32_82 : i32
    %223 = arith.addi %222, %c1_i32_75 : i32
    %c8_i32_83 = arith.constant 8 : i32
    %224 = arith.cmpi slt, %223, %c8_i32_83 : i32
    %225 = arith.select %224, %221, %188 : vector<8x32xf32>
    %226 = arith.select %224, %219, %189 : vector<8x32xf32>
    %c2_i32_84 = arith.constant 2 : i32
    %c8_i32_85 = arith.constant 8 : i32
    %227 = arith.muli %c2_i32_84, %c8_i32_85 : i32
    %228 = tpu.assume_multiple %227, 8 : i32
    %229 = arith.index_cast %228 : i32 to index
    %c0_86 = arith.constant 0 : index
    %230 = vector.load %arg12[%229, %c0_86] : memref<24x128xf32, #tpu.memory_space<vmem>>, vector<8x128xf32>
    %231 = arith.truncf %225 : vector<8x32xf32> to vector<8x32xbf16>
    %cst_87 = arith.constant dense<0.000000e+00> : vector<8x128xf32>
    %232 = tpu.matmul %231, %141, %cst_87 {dimension_numbers = #tpu.dot_dimension_numbers<[1], [0], [0], [1], [0, 0, 1, 1], [], []>} : vector<8x32xbf16>, vector<32x128xbf16>, vector<8x128xf32> -> vector<8x128xf32>
    %233 = arith.addf %230, %232 : vector<8x128xf32>
    %234 = vector.extract_strided_slice %233 {offsets = [0, 0], sizes = [8, 32], strides = [1, 1]} : vector<8x128xf32> to vector<8x32xf32>
    %235 = arith.negf %234 : vector<8x32xf32>
    %236 = math.exp %235 : vector<8x32xf32>
    %cst_88 = arith.constant 1.000000e+00 : f32
    %237 = vector.broadcast %cst_88 : f32 to vector<8x32xf32>
    %238 = arith.addf %237, %236 : vector<8x32xf32>
    %239 = arith.divf %237, %238 : vector<8x32xf32>
    %240 = vector.extract_strided_slice %233 {offsets = [0, 32], sizes = [8, 32], strides = [1, 1]} : vector<8x128xf32> to vector<8x32xf32>
    %241 = arith.negf %240 : vector<8x32xf32>
    %242 = math.exp %241 : vector<8x32xf32>
    %cst_89 = arith.constant 1.000000e+00 : f32
    %243 = vector.broadcast %cst_89 : f32 to vector<8x32xf32>
    %244 = arith.addf %243, %242 : vector<8x32xf32>
    %245 = arith.divf %243, %244 : vector<8x32xf32>
    %246 = vector.extract_strided_slice %233 {offsets = [0, 64], sizes = [8, 32], strides = [1, 1]} : vector<8x128xf32> to vector<8x32xf32>
    %247 = math.tanh %246 : vector<8x32xf32>
    %248 = vector.extract_strided_slice %233 {offsets = [0, 96], sizes = [8, 32], strides = [1, 1]} : vector<8x128xf32> to vector<8x32xf32>
    %249 = arith.negf %248 : vector<8x32xf32>
    %250 = math.exp %249 : vector<8x32xf32>
    %cst_90 = arith.constant 1.000000e+00 : f32
    %251 = vector.broadcast %cst_90 : f32 to vector<8x32xf32>
    %252 = arith.addf %251, %250 : vector<8x32xf32>
    %253 = arith.divf %251, %252 : vector<8x32xf32>
    %254 = arith.mulf %245, %226 : vector<8x32xf32>
    %255 = arith.mulf %239, %247 : vector<8x32xf32>
    %256 = arith.addf %254, %255 : vector<8x32xf32>
    %257 = math.tanh %256 : vector<8x32xf32>
    %258 = arith.mulf %253, %257 : vector<8x32xf32>
    %c3_i32_91 = arith.constant 3 : i32
    %259 = arith.muli %arg1, %c3_i32_91 : i32
    %260 = arith.addi %259, %c2_i32_84 : i32
    %c8_i32_92 = arith.constant 8 : i32
    %261 = arith.cmpi slt, %260, %c8_i32_92 : i32
    %262 = arith.select %261, %258, %225 : vector<8x32xf32>
    %263 = arith.select %261, %256, %226 : vector<8x32xf32>
    %c3_i32_93 = arith.constant 3 : i32
    %c1_94 = arith.constant 1 : index
    %c0_95 = arith.constant 0 : index
    %c0_96 = arith.constant 0 : index
    %264 = vector.load %arg14[%c1_94, %c0_95, %c0_96] : memref<2x8x32xf32, #tpu.memory_space<vmem>>, vector<1x8x32xf32>
    %265 = vector.shape_cast %264 : vector<1x8x32xf32> to vector<8x32xf32>
    %266 = vector.shape_cast %262 : vector<8x32xf32> to vector<1x8x32xf32>
    tpu.vector_store %arg14[%c1_94, %c0_95, %c0_96], %266 {strides = array<i32>} : memref<2x8x32xf32, #tpu.memory_space<vmem>>, vector<1x8x32xf32>,
    %c1_97 = arith.constant 1 : index
    %c0_98 = arith.constant 0 : index
    %c0_99 = arith.constant 0 : index
    %267 = vector.load %arg15[%c1_97, %c0_98, %c0_99] : memref<2x8x32xf32, #tpu.memory_space<vmem>>, vector<1x8x32xf32>
    %268 = vector.shape_cast %267 : vector<1x8x32xf32> to vector<8x32xf32>
    %269 = vector.shape_cast %263 : vector<8x32xf32> to vector<1x8x32xf32>
    tpu.vector_store %arg15[%c1_97, %c0_98, %c0_99], %269 {strides = array<i32>} : memref<2x8x32xf32, #tpu.memory_space<vmem>>, vector<1x8x32xf32>,
    %c2_i32_100 = arith.constant 2 : i32
    %270 = arith.cmpi eq, %arg1, %c2_i32_100 : i32
    %271 = arith.extui %270 : i1 to i32
    %c0_i32_101 = arith.constant 0 : i32
    %272 = arith.cmpi ne, %271, %c0_i32_101 : i32
    scf.if %272 {
      %273 = arith.truncf %262 : vector<8x32xf32> to vector<8x32xbf16>
      %c0_102 = arith.constant 0 : index
      %c0_103 = arith.constant 0 : index
      %274 = vector.load %arg9[%c0_102, %c0_103] : memref<32x128xbf16, #tpu.memory_space<vmem>>, vector<32x128xbf16>
      %cst_104 = arith.constant dense<0.000000e+00> : vector<8x128xf32>
      %275 = tpu.matmul %273, %274, %cst_104 {dimension_numbers = #tpu.dot_dimension_numbers<[1], [0], [0], [1], [0, 0, 1, 1], [], []>} : vector<8x32xbf16>, vector<32x128xbf16>, vector<8x128xf32> -> vector<8x128xf32>
      %c0_105 = arith.constant 0 : index
      %c0_106 = arith.constant 0 : index
      %276 = vector.load %arg10[%c0_105, %c0_106] : memref<1x128xf32, #tpu.memory_space<vmem>>, vector<1x128xf32>
      %277 = vector.broadcast %276 : vector<1x128xf32> to vector<8x128xf32>
      %278 = arith.addf %275, %277 : vector<8x128xf32>
      %c0_107 = arith.constant 0 : index
      %c0_108 = arith.constant 0 : index
      %279 = vector.load %arg11[%c0_107, %c0_108] : memref<8x128xf32, #tpu.memory_space<vmem>>, vector<8x128xf32>
      tpu.vector_store %arg11[%c0_107, %c0_108], %278 {strides = array<i32>} : memref<8x128xf32, #tpu.memory_space<vmem>>, vector<8x128xf32>,
    } else {
    }
    return
  }
  func.func @transform_0(%arg0: i32, %arg1: i32) -> (i32, i32, i32) {
    %c0_i32 = arith.constant 0 : i32
    %c0_i32_0 = arith.constant 0 : i32
    return %arg1, %arg0, %c0_i32 : i32, i32, i32
  }
  func.func @transform_1(%arg0: i32, %arg1: i32) -> (i32, i32) {
    %c0_i32 = arith.constant 0 : i32
    %c0_i32_0 = arith.constant 0 : i32
    %c0_i32_1 = arith.constant 0 : i32
    return %c0_i32, %c0_i32_0 : i32, i32
  }
  func.func @transform_2(%arg0: i32, %arg1: i32) -> (i32, i32) {
    %c0_i32 = arith.constant 0 : i32
    %c0_i32_0 = arith.constant 0 : i32
    %c0_i32_1 = arith.constant 0 : i32
    return %c0_i32, %c0_i32_0 : i32, i32
  }
  func.func @transform_3(%arg0: i32, %arg1: i32) -> (i32, i32) {
    %c0_i32 = arith.constant 0 : i32
    %c0_i32_0 = arith.constant 0 : i32
    %c0_i32_1 = arith.constant 0 : i32
    return %c0_i32, %c0_i32_0 : i32, i32
  }
  func.func @transform_4(%arg0: i32, %arg1: i32) -> (i32, i32) {
    %c0_i32 = arith.constant 0 : i32
    %c0_i32_0 = arith.constant 0 : i32
    %c0_i32_1 = arith.constant 0 : i32
    return %c0_i32, %c0_i32_0 : i32, i32
  }
  func.func @transform_5(%arg0: i32, %arg1: i32) -> (i32, i32) {
    %c0_i32 = arith.constant 0 : i32
    %c0_i32_0 = arith.constant 0 : i32
    %c0_i32_1 = arith.constant 0 : i32
    return %c0_i32, %c0_i32_0 : i32, i32
  }
  func.func @transform_6(%arg0: i32, %arg1: i32) -> (i32, i32) {
    %c0_i32 = arith.constant 0 : i32
    %c0_i32_0 = arith.constant 0 : i32
    %c0_i32_1 = arith.constant 0 : i32
    return %c0_i32, %c0_i32_0 : i32, i32
  }
  func.func @transform_7(%arg0: i32, %arg1: i32) -> (i32, i32) {
    %c0_i32 = arith.constant 0 : i32
    %c0_i32_0 = arith.constant 0 : i32
    %c0_i32_1 = arith.constant 0 : i32
    return %c0_i32, %c0_i32_0 : i32, i32
  }
  func.func @transform_8(%arg0: i32, %arg1: i32) -> (i32, i32) {
    %c0_i32 = arith.constant 0 : i32
    %c0_i32_0 = arith.constant 0 : i32
    %c0_i32_1 = arith.constant 0 : i32
    return %c0_i32, %c0_i32_0 : i32, i32
  }
  func.func @transform_9(%arg0: i32, %arg1: i32) -> (i32, i32) {
    %c0_i32 = arith.constant 0 : i32
    %c0_i32_0 = arith.constant 0 : i32
    return %arg0, %c0_i32 : i32, i32
  }
}

</mosaic_0001>

<bundles_post_ra>
// kernel: tpu_custom_call.1
= control target key start
LH: loop header
LB: loop body
LE: loop exit
PB: predicated region body
PF: predicated region fallthrough
CT: control target
= control target key end

     0   :  { %14 = vsyncpa [#allocation7], 0  ;;  %s1294_s30 = smov 0   ;;  %s1296_s10 = smov 0   ;;  %s1521_s0 = inlined_call_operand.vmem [shape: f32[9,8,8], index: 0, kind: input, shape index: {}]   ;;  %s1522_s1 = inlined_call_operand.vmem [shape: bf16[8,128], index: 1, kind: input, shape index: {}]   ;;  %s1523_s2 = inlined_call_operand.vmem [shape: bf16[32,128], index: 2, kind: input, shape index: {}]   ;;  %s1524_s3 = inlined_call_operand.vmem [shape: f32[1,128], index: 3, kind: input, shape index: {}]   ;;  %s1525_s4 = inlined_call_operand.vmem [shape: bf16[32,128], index: 4, kind: input, shape index: {}]   ;;  %s1526_s5 = inlined_call_operand.vmem [shape: bf16[32,128], index: 5, kind: input, shape index: {}]   ;;  %s1527_s6 = inlined_call_operand.vmem [shape: f32[1,128], index: 6, kind: input, shape index: {}]   ;;  %s1528_s7 = inlined_call_operand.vmem [shape: bf16[32,128], index: 7, kind: input, shape index: {}]   ;;  %s1529_s8 = inlined_call_operand.vmem [shape: f32[1,128], index: 8, kind: input, shape index: {}]   ;;  %s1530_s9 = inlined_call_operand.hbm [shape: f32[8,128], index: 9, kind: output, shape index: {}]  }
   0x1   :  { %s1298_s11 = smov 0  }
   0x2 LB: > { %s1027_s12 = sadd.s32 4294967295, %s1236_s11   ;;  %s29_s13 = sadd.s32 1, %s1232_s10  ;;  %s1236_s11 = sphi %s1298_s11, %s20_s11   ;;  %s1232_s10 = sphi %s1296_s10, %s1534_s10   ;;  %s1228_s30 = sphi %s1294_s30, %s1533_s30  }
   0x3   : > { %p30_p0 = scmp.ge.s32.totalorder %s29_s13, 3  ;;  %p1030_p1 = scmp.ge.s32.totalorder %s1236_s11, 1 }
   0x4   : > { %p306_p2 = scmp.lt.s32.totalorder %s1236_s11, 4 }
   0x5   : > { %s1536_s13 = smov (%p30_p0, %s29_s13), 0 }
   0x6   : > { %p307_p3 = pnand %p1030_p1, %p306_p2 }
   0x7   : > { %s1316_s14 = smul.u32 (!%p307_p3), 3, %s1228_s30  ;;  %p1032_p5 = scmp.ne.s32.totalorder (!%p307_p3), %s1228_s30, 0 }
   0x8   : > { %310 = sbr.rel (%p307_p3) target bundleno = 3197 (0xc7d), region = 56 }
   0x9   : > { %p341_p4 = scmp.lt.s32.totalorder (!%p307_p3), %s1316_s14, 8 }
   0xd   : > { %s342_s15 = scalar_select %p341_p4, %s1316_s14, 8 }
   0xe   : > { %353 = sbr.rel (%p1032_p5) target bundleno = 24 (0x18), region = 60 }
   0xf   : > { %s1031_s16 = sshll.u32 %s342_s15, 3 }
  0x10   : > { %s1325_s19 = scalar_lea.vmem %s1521_s0, %s1031_s16 }
  0x13   : > { %vm354_vm0 = vcmask 261120   ;;  %v1238_v0 = vmov 0.0  }
  0x14   : > { %355 = vst.msk [vmem:[#allocation4] sm:$0xff] %vm354_vm0, %v1238_v0 }
  0x15   : > { %356 = vst.msk [vmem:[#allocation4 + $0x8] sm:$0xff] %vm354_vm0, %v1238_v0 }
  0x16   : > { %357 = vst.msk [vmem:[#allocation5] sm:$0xff] %vm354_vm0, %v1238_v0 }
  0x17   : > { %358 = vst.msk [vmem:[#allocation5 + $0x8] sm:$0xff] %vm354_vm0, %v1238_v0 }
  0x18 PF: > { %v359_v1 = vld [vmem:[%s1522_s1] sm:$0xf]  ;;  %vm380_vm1 = vcmask 1043456   ;;  %v1088_v2 = vld [vmem:[%s1523_s2 + $0x8] sm:$0xff]  ;;  %vm373_vm2 = vcmask 64512   ;;  %vm421_vm3 = vcmask 261120  }
  0x19   : > { %v365_v3 = vld [vmem:[%s1325_s19] sm:$0xff]  ;;  %v382_v4 = vsel %vm380_vm1, %v359_v1, 0  ;;  %v366_v5 = vld [vmem:[%s1325_s19 + $0x8] sm:$0xff]  ;;  %431 = vmatpush.bf16.msra.mxu1 %v1088_v2  ;;  %511 = vmatpush.bf16.msra.mxu2 %v1088_v2  ;;  %s1239_s28 = smov 64   ;;  %s1240_s29 = smov 32  }
  0x1a   : > { %v1087_v6 = vld [vmem:[%s1523_s2] sm:$0xff]  ;;  %391 = vmatpush.bf16.msra.mxu0 %v382_v4  ;;  %v368_v7 = vpack.c.bf16 %v366_v5, %v365_v3  ;;  %584 = vmatpush.bf16.msra.mxu3 %v1088_v2  ;;  %s1241_s15 = smov 96   ;;  %s556_s24 = sadd.s32 1, %s1316_s14 }
  0x1b   : > { %v405_v8 = vld [vmem:[#allocation4] sm:$0xff]  ;;  %v1344_v10 = vld [vmem:[%s1524_s3] ss:$0 sm:$0xff]  ;;  %s482_s16 = scalar_select %p341_p4, 1, 0 }
  0x1c   : > { %v408_v9 = vpack.c.bf16 %v405_v8, %v405_v8  ;;  %486 = vrot.lane.b32.xlu2 %v405_v8, %s1241_s15  ;;  %p557_p6 = scmp.lt.s32.totalorder %s556_s24, 8  ;;  %p1073_p8 = scmp.ne.s32.totalorder %s1228_s30, 2 }
  0x1d   : > { %1033 = vmatmul.msk.bf16.vlgmr.msra.gmra.mxu0 %vm373_vm2, %v368_v7  ;;  %432 = vmatpush.bf16.msra.mxu1 %v1087_v6  ;;  %v406_v17 = vld [vmem:[#allocation5] sm:$0xff]  ;;  %v483_v38 = vstv %s482_s16 }
  0x1e   : > { %512 = vmatpush.bf16.msra.mxu2 %v1087_v6  ;;  %585 = vmatpush.bf16.msra.mxu3 %v1087_v6  ;;  %vm1354_vm8 = vcmp.eq.s32.totalorder %v483_v38, 1  ;;  %s558_s25 = scalar_select %p557_p6, 1, 0 }
  0x20   : > { %1043 = vmatmul.msk.bf16.vlgmr.msra.gmra.mxu1 %vm421_vm3, %v408_v9  ;;  %v1092_v9 = vld [vmem:[%s1526_s5 + $0x8] sm:$0xff] }
  0x21   : > { %861 = vmatpush.bf16.msrb.mxu0 %v1092_v9 }
  0x22   : > { %731 = vmatpush.bf16.msrb.mxu2 %v1092_v9  ;;  %800 = vmatpush.bf16.msrb.mxu3 %v1092_v9 }
  0x76   : > { %v487_v40 = vpop.permute.xlu2 %486 }
  0x9a   : > { %v393_v11 = vpop.f32.mrf.mxu0 }
  0x9b   : > { %v394_v12 = vadd.f32 %v1344_v10, %v393_v11  ;;  %v1090_v11 = vld [vmem:[%s1525_s4 + $0x8] sm:$0xff] }
  0x9c   : > { %689 = vmatpush.bf16.msrb.mxu1 %v1090_v11 }
  0x9d   : > { %v434_v13 = vpop.f32.mrf.mxu1 }
  0x9e   : > { %v438_v14 = vadd.f32 %v434_v13, %v394_v12  ;;  %v1091_v12 = vld [vmem:[%s1526_s5] sm:$0xff] }
  0x9f   : > { %v705_v13 = vld [vmem:[#allocation4 + $0x8] sm:$0xff]  ;;  %732 = vmatpush.bf16.msrb.mxu2 %v1091_v12  ;;  %801 = vmatpush.bf16.msrb.mxu3 %v1091_v12 }
  0xa0   : > { %1133 = vtanh.f32 %v438_v14  ;;  %v1044_v18 = vmul.f32 -1.442695, %v438_v14  ;;  %v709_v14 = vpack.c.bf16 %v705_v13, %v705_v13  ;;  %862 = vmatpush.bf16.msrb.mxu0 %v1091_v12 }
  0xa2   : > { %1135 = vpow2.f32 %v1044_v18  ;;  %v395_v46 = vpop.f32.mrf.mxu0 }
  0xa3   : > { %v396_v47 = vadd.f32 %v1344_v10, %v395_v46 }
  0xa5   : > { %v436_v15 = vpop.f32.mrf.mxu1 }
  0xa6   : > { %v1134_v16 = vpop.eup %1133  ;;  %v1392_v15 = vstv %s558_s25 }
  0xa7   : > { %465 = vrot.lane.b32.xlu0 %v1134_v16, %s1239_s28  ;;  %vm560_vm13 = vcmp.eq.s32.totalorder %v1392_v15, 1 }
  0xa8   : > { %v1136_v19 = vpop.eup %1135 }
  0xa9   : > { %v442_v20 = vadd.f32 1.0, %v1136_v19  ;;  %v1089_v19 = vld [vmem:[%s1525_s4] sm:$0xff] }
  0xaa   : > { %690 = vmatpush.bf16.msrb.mxu1 %v1089_v19 }
  0xab   : > { %1137 = vrcp.f32 %v442_v20  ;;  %v454_v26 = vand.u32 2147483648, %v442_v20  ;;  %vm448_vm5 = vweird.f32 %v442_v20  ;;  %v452_v27 = vand.u32 2147483647, %v442_v20 }
  0xad   : > { %v455_v29 = vor.u32 1.1754944e-38, %v454_v26  ;;  %vm453_vm7 = vcmp.eq.f32.partialorder %v452_v27, 8.507059e+37  ;;  %v1412_v27 = vld [vmem:[%s1527_s6] ss:$0 sm:$0xff] }
  0xaf   : > { %460 = vrot.lane.b32.xlu0 %v406_v17, %s1240_s29 }
  0xb1   : > { %v1138_v21 = vpop.eup %1137 }
  0xb2   : > { %v444_v22 = vmul.f32 %v1138_v21, %v442_v20  ;;  %vm449_vm4 = vweird.f32 %v1138_v21  ;;  %v707_v20 = vld [vmem:[#allocation5 + $0x8] sm:$0xff] }
  0xb3   : > { %vm450_vm6 = vmor %vm448_vm5, %vm449_vm4 }
  0xb4   : > { %v445_v23 = vsub.f32 1.0, %v444_v22 }
  0xb6   : > { %v446_v24 = vmul.f32 %v1138_v21, %v445_v23 }
  0xb8   : > { %v447_v25 = vadd.f32 %v1138_v21, %v446_v24 }
  0xba   : > { %v451_v28 = vsel %vm450_vm6, %v1138_v21, %v447_v25 }
  0xbb   : > { %v456_v31 = vsel %vm453_vm7, %v455_v29, %v451_v28 }
 0x119   : > { %v466_v30 = vpop.permute.xlu0 %465 }
 0x11a   : > { %v468_v32 = vmul.f32 %v466_v30, %v456_v31 }
 0x11c   : > { %470 = vrot.lane.b32.xlu1 %v468_v32, %s1240_s29 }
 0x121   : > { %v461_v33 = vpop.permute.xlu0 %460 }
 0x122   : > { %v463_v34 = vmul.f32 %v461_v33, %v456_v31 }
 0x18e   : > { %v471_v35 = vpop.permute.xlu1 %470 }
 0x18f   : > { %v473_v36 = vadd.f32 %v471_v35, %v463_v34 }
 0x191   : > { %1139 = vtanh.f32 %v473_v36  ;;  %v1374_v4 = vsel %vm1354_vm8, %v473_v36, %v461_v33 }
 0x197   : > { %v1140_v37 = vpop.eup %1139 }
 0x198   : > { %476 = vrot.lane.b32.xlu1 %v1140_v37, %s1239_s28 }
 0x20a   : > { %v477_v39 = vpop.permute.xlu1 %476 }
 0x20b   : > { %v479_v41 = vmul.f32 %v477_v39, %v456_v31 }
 0x20d   : > { %v1360_v43 = vsel %vm1354_vm8, %v479_v41, %v487_v40 }
 0x20e   : > { %v498_v44 = vpack.c.bf16 %v1360_v43, %v1360_v43 }
 0x210   : > { %500 = vrot.lane.b32.xlu2 %v498_v44, %s1240_s29 }
 0x26a   : > { %v501_v45 = vpop.permute.xlu2 %500 }
 0x26b   : > { %1045 = vmatmul.msk.bf16.vlgmr.msra.gmra.mxu2 %vm421_vm3, %v501_v45 }
 0x27b   : > { %1067 = vmatmul.msk.bf16.vlgmr.msrb.gmra.mxu2 %vm421_vm3, %v709_v14 }
 0x2ee   : > { %v514_v48 = vpop.f32.mrf.mxu2 }
 0x2ef   : > { %v518_v49 = vadd.f32 %v514_v48, %v396_v47 }
 0x2f1   : > { %1141 = vtanh.f32 %v518_v49  ;;  %v1046_v52 = vmul.f32 -1.442695, %v518_v49  ;;  %v367_v49 = vld [vmem:[%s1325_s19 + $0x10] sm:$0xff]  ;;  %s629_s19 = sadd.s32 2, %s1316_s14 }
 0x2f2   : > { %p630_p7 = scmp.lt.s32.totalorder %s629_s19, 8 }
 0x2f3   : > { %1143 = vpow2.f32 %v1046_v52 }
 0x2f4   : > { %s631_s18 = scalar_select %p630_p7, 1, 0 }
 0x2f6   : > { %v516_v50 = vpop.f32.mrf.mxu2 }
 0x2f7   : > { %v1142_v51 = vpop.eup %1141  ;;  %v369_v50 = vpack.c.bf16 %v367_v49, %v367_v49 }
 0x2f8   : > { %541 = vrot.lane.b32.xlu0 %v1142_v51, %s1239_s28 }
 0x2f9   : > { %v1144_v53 = vpop.eup %1143  ;;  %1034 = vmatmul.msk.bf16.gmra.mxu0 %vm373_vm2, %v369_v50 }
 0x2fa   : > { %v522_v54 = vadd.f32 1.0, %v1144_v53 }
 0x2fc   : > { %1145 = vrcp.f32 %v522_v54  ;;  %v534_v60 = vand.u32 2147483648, %v522_v54  ;;  %vm528_vm10 = vweird.f32 %v522_v54  ;;  %v532_v61 = vand.u32 2147483647, %v522_v54 }
 0x2fe   : > { %v535_v63 = vor.u32 1.1754944e-38, %v534_v60  ;;  %vm533_vm12 = vcmp.eq.f32.partialorder %v532_v61, 8.507059e+37  ;;  %v734_v21 = vpop.f32.mrf.mxu2 }
 0x300   : > { %492 = vrot.lane.b32.xlu0 %v1360_v43, %s1240_s29 }
 0x302   : > { %v1146_v55 = vpop.eup %1145 }
 0x303   : > { %v524_v56 = vmul.f32 %v1146_v55, %v522_v54  ;;  %vm529_vm9 = vweird.f32 %v1146_v55 }
 0x304   : > { %vm530_vm11 = vmor %vm528_vm10, %vm529_vm9 }
 0x305   : > { %v525_v57 = vsub.f32 1.0, %v524_v56 }
 0x306   : > { %v736_v23 = vpop.f32.mrf.mxu2 }
 0x307   : > { %v526_v58 = vmul.f32 %v1146_v55, %v525_v57 }
 0x308   : > { %760 = vrot.lane.b32.xlu0 %v707_v20, %s1240_s29 }
 0x309   : > { %v527_v59 = vadd.f32 %v1146_v55, %v526_v58 }
 0x30b   : > { %v531_v62 = vsel %vm530_vm11, %v1146_v55, %v527_v59 }
 0x30c   : > { %v536_v1 = vsel %vm533_vm12, %v535_v63, %v531_v62 }
 0x30d   : > { %v539_v5 = vmul.f32 %v536_v1, %v1374_v4 }
 0x310   : > { %781 = vrot.lane.b32.xlu0 %v705_v13, %s1241_s15 }
 0x36a   : > { %v542_v0 = vpop.permute.xlu0 %541 }
 0x36b   : > { %v544_v2 = vmul.f32 %v542_v0, %v536_v1 }
 0x36d   : > { %546 = vrot.lane.b32.xlu1 %v544_v2, %s1240_s29 }
 0x372   : > { %v493_v3 = vpop.permute.xlu0 %492 }
 0x373   : > { %495 = vst.msk [vmem:[#allocation3] sm:$0xff] %vm421_vm3, %v493_v3 }
 0x376   : > { %v398_v62 = vpop.f32.mrf.mxu0 }
 0x377   : > { %v399_v0 = vadd.f32 %v1344_v10, %v398_v62 }
 0x37a   : > { %v657_v24 = vld [vmem:[#allocation3] sm:$0xff]  ;;  %v1422_v51 = vpop.permute.xlu0 %760 }
 0x37e   : > { %v400_v63 = vpop.f32.mrf.mxu0 }
 0x382   : > { %v782_v58 = vpop.permute.xlu0 %781 }
 0x3df   : > { %v547_v6 = vpop.permute.xlu1 %546 }
 0x3e0   : > { %v1377_v7 = vadd.f32 %v547_v6, %v539_v5 }
 0x3e2   : > { %1147 = vtanh.f32 %v1377_v7 }
 0x3e8   : > { %v1148_v8 = vpop.eup %1147 }
 0x3e9   : > { %552 = vrot.lane.b32.xlu2 %v1148_v8, %s1239_s28 }
 0x443   : > { %v553_v16 = vpop.permute.xlu2 %552 }
 0x444   : > { %v555_v17 = vmul.f32 %v553_v16, %v536_v1 }
 0x446   : > { %v1398_v18 = vsel %vm560_vm13, %v555_v17, %v1360_v43 }
 0x447   : > { %564 = vrot.lane.b32.xlu1 %v1398_v18, %s1240_s29  ;;  %v571_v48 = vpack.c.bf16 %v1398_v18, %v1398_v18 }
 0x4b9   : > { %v565_v22 = vpop.permute.xlu1 %564 }
 0x4ba   : > { %568 = vst.msk [vmem:[#allocation3 + $0x8] sm:$0xff] %vm421_vm3, %v565_v22 }
 0x4c1   : > { %v658_v25 = vld [vmem:[#allocation3 + $0x8] sm:$0xff] }
 0x4c2   : > { %v660_v26 = vpack.c.bf16 %v658_v25, %v657_v24 }
 0x4c4   : > { %1057 = vmatmul.msk.bf16.vlgmr.msrb.gmra.mxu1 %vm421_vm3, %v660_v26 }
 0x541   : > { %v692_v28 = vpop.f32.mrf.mxu1 }
 0x542   : > { %v693_v29 = vadd.f32 %v1412_v27, %v692_v28 }
 0x544   : > { %v738_v30 = vadd.f32 %v734_v21, %v693_v29 }
 0x546   : > { %1149 = vtanh.f32 %v738_v30  ;;  %v1068_v32 = vmul.f32 -1.442695, %v738_v30 }
 0x548   : > { %1151 = vpow2.f32 %v1068_v32  ;;  %v1447_v32 = vsel %vm560_vm13, %v1377_v7, %v1374_v4 }
 0x549   : > { %v694_v25 = vpop.f32.mrf.mxu1 }
 0x54a   : > { %v695_v26 = vadd.f32 %v1412_v27, %v694_v25 }
 0x54c   : > { %v1150_v31 = vpop.eup %1149 }
 0x54d   : > { %765 = vrot.lane.b32.xlu2 %v1150_v31, %s1239_s28 }
 0x54e   : > { %v1152_v33 = vpop.eup %1151 }
 0x54f   : > { %v742_v34 = vadd.f32 1.0, %v1152_v33 }
 0x551   : > { %1153 = vrcp.f32 %v742_v34  ;;  %v754_v40 = vand.u32 2147483648, %v742_v34  ;;  %vm748_vm15 = vweird.f32 %v742_v34  ;;  %v752_v41 = vand.u32 2147483647, %v742_v34 }
 0x553   : > { %v755_v44 = vor.u32 1.1754944e-38, %v754_v40  ;;  %vm753_vm1 = vcmp.eq.f32.partialorder %v752_v41, 8.507059e+37 }
 0x557   : > { %v1154_v35 = vpop.eup %1153 }
 0x558   : > { %v744_v36 = vmul.f32 %v1154_v35, %v742_v34  ;;  %vm749_vm14 = vweird.f32 %v1154_v35 }
 0x559   : > { %vm750_vm0 = vmor %vm748_vm15, %vm749_vm14 }
 0x55a   : > { %v745_v37 = vsub.f32 1.0, %v744_v36 }
 0x55c   : > { %v746_v38 = vmul.f32 %v1154_v35, %v745_v37 }
 0x55e   : > { %v747_v39 = vadd.f32 %v1154_v35, %v746_v38 }
 0x560   : > { %v751_v43 = vsel %vm750_vm0, %v1154_v35, %v747_v39 }
 0x561   : > { %v756_v45 = vsel %vm753_vm1, %v755_v44, %v751_v43 }
 0x562   : > { %v763_v52 = vmul.f32 %v1422_v51, %v756_v45 }
 0x5a7   : > { %v766_v46 = vpop.permute.xlu2 %765 }
 0x5a8   : > { %v768_v47 = vmul.f32 %v766_v46, %v756_v45 }
 0x5aa   : > { %770 = vrot.lane.b32.xlu1 %v768_v47, %s1240_s29 }
 0x5b2   : > { %573 = vrot.lane.b32.xlu1 %v571_v48, %s1240_s29 }
 0x61c   : > { %v771_v53 = vpop.permute.xlu1 %770 }
 0x61d   : > { %v1425_v54 = vadd.f32 %v771_v53, %v763_v52  ;;  %v1456_v52 = vstv %s631_s18 }
 0x61e   : > { %vm633_vm12 = vcmp.eq.s32.totalorder %v1456_v52, 1 }
 0x61f   : > { %1155 = vtanh.f32 %v1425_v54 }
 0x624   : > { %v574_v55 = vpop.permute.xlu1 %573 }
 0x625   : > { %v1156_v56 = vpop.eup %1155  ;;  %1047 = vmatmul.msk.bf16.vlgmr.msra.gmra.mxu3 %vm421_vm3, %v574_v55 }
 0x626   : > { %776 = vrot.lane.b32.xlu2 %v1156_v56, %s1239_s28 }
 0x680   : > { %v777_v57 = vpop.permute.xlu2 %776 }
 0x681   : > { %v779_v59 = vmul.f32 %v777_v57, %v756_v45  ;;  %v785_v57 = vsel %vm1354_vm8, %v1425_v54, %v1422_v51 }
 0x683   : > { %v1432_v60 = vsel %vm1354_vm8, %v779_v59, %v782_v58 }
 0x684   : > { %v787_v61 = vpack.c.bf16 %v1432_v60, %v1432_v60 }
 0x686   : > { %789 = vrot.lane.b32.xlu2 %v787_v61, %s1240_s29 }
 0x6a8   : > { %v587_v1 = vpop.f32.mrf.mxu3 }
 0x6a9   : > { %v591_v2 = vadd.f32 %v587_v1, %v399_v0 }
 0x6ab   : > { %1157 = vtanh.f32 %v591_v2  ;;  %v1048_v8 = vmul.f32 -1.442695, %v591_v2 }
 0x6ad   : > { %1159 = vpow2.f32 %v1048_v8 }
 0x6b0   : > { %v589_v3 = vpop.f32.mrf.mxu3 }
 0x6b1   : > { %v1158_v5 = vpop.eup %1157 }
 0x6b2   : > { %614 = vrot.lane.b32.xlu0 %v1158_v5, %s1239_s28 }
 0x6b3   : > { %v1160_v9 = vpop.eup %1159 }
 0x6b4   : > { %v595_v11 = vadd.f32 1.0, %v1160_v9 }
 0x6b6   : > { %1161 = vrcp.f32 %v595_v11  ;;  %v607_v17 = vand.u32 2147483648, %v595_v11  ;;  %vm601_vm4 = vweird.f32 %v595_v11  ;;  %v605_v19 = vand.u32 2147483647, %v595_v11 }
 0x6b8   : > { %v608_v21 = vor.u32 1.1754944e-38, %v607_v17  ;;  %vm606_vm6 = vcmp.eq.f32.partialorder %v605_v19, 8.507059e+37 }
 0x6bc   : > { %v1162_v12 = vpop.eup %1161 }
 0x6bd   : > { %v597_v13 = vmul.f32 %v1162_v12, %v595_v11  ;;  %vm602_vm2 = vweird.f32 %v1162_v12 }
 0x6be   : > { %vm603_vm5 = vmor %vm601_vm4, %vm602_vm2 }
 0x6bf   : > { %v598_v14 = vsub.f32 1.0, %v597_v13 }
 0x6c1   : > { %v599_v16 = vmul.f32 %v1162_v12, %v598_v14 }
 0x6c3   : > { %v600_v10 = vadd.f32 %v1162_v12, %v599_v16 }
 0x6c5   : > { %v604_v20 = vsel %vm603_vm5, %v1162_v12, %v600_v10 }
 0x6c6   : > { %v609_v23 = vsel %vm606_vm6, %v608_v21, %v604_v20 }
 0x6c7   : > { %v612_v33 = vmul.f32 %v609_v23, %v1447_v32 }
 0x6e0   : > { %v790_v6 = vpop.permute.xlu2 %789 }
 0x6e1   : > { %1069 = vmatmul.msk.bf16.vlgmr.msrb.gmra.mxu3 %vm421_vm3, %v790_v6 }
 0x724   : > { %v615_v22 = vpop.permute.xlu0 %614 }
 0x725   : > { %v617_v24 = vmul.f32 %v615_v22, %v609_v23 }
 0x727   : > { %619 = vrot.lane.b32.xlu2 %v617_v24, %s1240_s29 }
 0x764   : > { %v803_v28 = vpop.f32.mrf.mxu3 }
 0x765   : > { %v807_v29 = vadd.f32 %v803_v28, %v695_v26 }
 0x767   : > { %1163 = vtanh.f32 %v807_v29  ;;  %v1070_v37 = vmul.f32 -1.442695, %v807_v29 }
 0x76c   : > { %v805_v30 = vpop.f32.mrf.mxu3 }
 0x76d   : > { %v1164_v31 = vpop.eup %1163 }
 0x76e   : > { %830 = vrot.lane.b32.xlu1 %v1164_v31, %s1239_s28 }
 0x781   : > { %v620_v34 = vpop.permute.xlu2 %619 }
 0x782   : > { %v1450_v35 = vadd.f32 %v620_v34, %v612_v33 }
 0x784   : > { %1165 = vtanh.f32 %v1450_v35 }
 0x785   : > { %1167 = vpow2.f32 %v1070_v37 }
 0x78a   : > { %v1166_v36 = vpop.eup %1165 }
 0x78b   : > { %625 = vrot.lane.b32.xlu1 %v1166_v36, %s1239_s28  ;;  %v1168_v38 = vpop.eup %1167 }
 0x78c   : > { %v811_v39 = vadd.f32 1.0, %v1168_v38 }
 0x78e   : > { %1169 = vrcp.f32 %v811_v39  ;;  %v823_v44 = vand.u32 2147483648, %v811_v39  ;;  %vm817_vm9 = vweird.f32 %v811_v39  ;;  %v821_v45 = vand.u32 2147483647, %v811_v39 }
 0x790   : > { %v824_v47 = vor.u32 1.1754944e-38, %v823_v44  ;;  %vm822_vm11 = vcmp.eq.f32.partialorder %v821_v45, 8.507059e+37 }
 0x794   : > { %v1170_v40 = vpop.eup %1169 }
 0x795   : > { %v813_v41 = vmul.f32 %v1170_v40, %v811_v39  ;;  %vm818_vm7 = vweird.f32 %v1170_v40 }
 0x796   : > { %vm819_vm10 = vmor %vm817_vm9, %vm818_vm7 }
 0x797   : > { %v814_v4 = vsub.f32 1.0, %v813_v41 }
 0x799   : > { %v815_v7 = vmul.f32 %v1170_v40, %v814_v4 }
 0x79b   : > { %v816_v43 = vadd.f32 %v1170_v40, %v815_v7 }
 0x79d   : > { %v820_v46 = vsel %vm819_vm10, %v1170_v40, %v816_v43 }
 0x79e   : > { %v825_v49 = vsel %vm822_vm11, %v824_v47, %v820_v46 }
 0x79f   : > { %v828_v58 = vmul.f32 %v825_v49, %v785_v57 }
 0x7e0   : > { %v831_v48 = vpop.permute.xlu1 %830 }
 0x7e1   : > { %v833_v50 = vmul.f32 %v831_v48, %v825_v49 }
 0x7e3   : > { %835 = vrot.lane.b32.xlu0 %v833_v50, %s1240_s29 }
 0x7fd   : > { %v626_v53 = vpop.permute.xlu1 %625 }
 0x7fe   : > { %v628_v55 = vmul.f32 %v626_v53, %v609_v23 }
 0x800   : > { %v634_v56 = vsel %vm633_vm12, %v628_v55, %v1398_v18 }
 0x801   : > { %637 = vrot.lane.b32.xlu0 %v634_v56, %s1240_s29 }
 0x855   : > { %v836_v59 = vpop.permute.xlu0 %835 }
 0x856   : > { %v838_v61 = vadd.f32 %v836_v59, %v828_v58 }
 0x858   : > { %1171 = vtanh.f32 %v838_v61  ;;  %v846_v30 = vsel %vm560_vm13, %v838_v61, %v785_v57 }
 0x85e   : > { %v1172_v62 = vpop.eup %1171 }
 0x85f   : > { %841 = vrot.lane.b32.xlu2 %v1172_v62, %s1239_s28 }
 0x873   : > { %v638_v63 = vpop.permute.xlu0 %637 }
 0x874   : > { %641 = vst.msk [vmem:[#allocation3 + $0x10] sm:$0xff] %vm421_vm3, %v638_v63 }
 0x875   : > { %642 = vst.msk [vmem:[#allocation4] sm:$0xff] %vm421_vm3, %v638_v63 }
 0x87b   : > { %v659_v18 = vld [vmem:[#allocation3 + $0x10] sm:$0xff] }
 0x87c   : > { %v661_v0 = vpack.c.bf16 %v659_v18, %v659_v18 }
 0x87e   : > { %1058 = vmatmul.msk.bf16.gmra.mxu1 %vm421_vm3, %v661_v0 }
 0x8b9   : > { %v842_v1 = vpop.permute.xlu2 %841 }
 0x8ba   : > { %v844_v2 = vmul.f32 %v842_v1, %v825_v49 }
 0x8bc   : > { %v845_v42 = vsel %vm560_vm13, %v844_v2, %v1432_v60  ;;  %v635_v60 = vsel %vm633_vm12, %v1450_v35, %v1447_v32 }
 0x8bd   : > { %v848_v51 = vpack.c.bf16 %v845_v42, %v845_v42 }
 0x8bf   : > { %850 = vrot.lane.b32.xlu1 %v848_v51, %s1240_s29 }
 0x8fb   : > { %v697_v54 = vpop.f32.mrf.mxu1 }
 0x8fc   : > { %v698_v6 = vadd.f32 %v1412_v27, %v697_v54 }
 0x903   : > { %v699_v3 = vpop.f32.mrf.mxu1 }
 0x931   : > { %v851_v5 = vpop.permute.xlu1 %850 }
 0x932   : > { %1071 = vmatmul.msk.bf16.vlgmr.msrb.gmra.mxu0 %vm421_vm3, %v851_v5 }
 0x9af   : > { %v864_v8 = vpop.f32.mrf.mxu0 }
 0x9b0   : > { %v868_v9 = vadd.f32 %v864_v8, %v698_v6 }
 0x9b2   : > { %1173 = vtanh.f32 %v868_v9  ;;  %v1072_v13 = vmul.f32 -1.442695, %v868_v9 }
 0x9b4   : > { %1175 = vpow2.f32 %v1072_v13 }
 0x9b7   : > { %v866_v11 = vpop.f32.mrf.mxu0 }
 0x9b8   : > { %v1174_v12 = vpop.eup %1173 }
 0x9b9   : > { %891 = vrot.lane.b32.xlu2 %v1174_v12, %s1239_s28 }
 0x9ba   : > { %v1176_v14 = vpop.eup %1175 }
 0x9bb   : > { %v872_v16 = vadd.f32 1.0, %v1176_v14 }
 0x9bd   : > { %1177 = vrcp.f32 %v872_v16  ;;  %v884_v21 = vand.u32 2147483648, %v872_v16  ;;  %vm878_vm14 = vweird.f32 %v872_v16  ;;  %v882_v22 = vand.u32 2147483647, %v872_v16 }
 0x9bf   : > { %v885_v24 = vor.u32 1.1754944e-38, %v884_v21  ;;  %vm883_vm0 = vcmp.eq.f32.partialorder %v882_v22, 8.507059e+37 }
 0x9c1   : > { %644 = vrot.lane.b32.xlu2 %v635_v60, %s1241_s15 }
 0x9c3   : > { %v1178_v27 = vpop.eup %1177 }
 0x9c4   : > { %v874_v10 = vmul.f32 %v1178_v27, %v872_v16  ;;  %vm879_vm8 = vweird.f32 %v1178_v27 }
 0x9c5   : > { %vm880_vm15 = vmor %vm878_vm14, %vm879_vm8 }
 0x9c6   : > { %v875_v17 = vsub.f32 1.0, %v874_v10 }
 0x9c8   : > { %v876_v19 = vmul.f32 %v1178_v27, %v875_v17 }
 0x9ca   : > { %v877_v20 = vadd.f32 %v1178_v27, %v876_v19 }
 0x9cc   : > { %v881_v23 = vsel %vm880_vm15, %v1178_v27, %v877_v20 }
 0x9cd   : > { %v886_v26 = vsel %vm883_vm0, %v885_v24, %v881_v23 }
 0x9ce   : > { %v889_v31 = vmul.f32 %v886_v26, %v846_v30 }
 0xa13   : > { %v892_v25 = vpop.permute.xlu2 %891 }
 0xa14   : > { %v894_v28 = vmul.f32 %v892_v25, %v886_v26 }
 0xa16   : > { %896 = vrot.lane.b32.xlu0 %v894_v28, %s1240_s29 }
 0xa1b   : > { %v645_v29 = vpop.permute.xlu2 %644 }
 0xa1c   : > { %647 = vst.msk [vmem:[#allocation5] sm:$0xff] %vm421_vm3, %v645_v29 }
 0xa88   : > { %v897_v32 = vpop.permute.xlu0 %896 }
 0xa89   : > { %v899_v33 = vadd.f32 %v897_v32, %v889_v31 }
 0xa8b   : > { %1179 = vtanh.f32 %v899_v33  ;;  %v907_v35 = vsel %vm633_vm12, %v899_v33, %v846_v30 }
 0xa91   : > { %v1180_v34 = vpop.eup %1179 }
 0xa92   : > { %902 = vrot.lane.b32.xlu1 %v1180_v34, %s1239_s28 }
 0xa9a   : > { %914 = vrot.lane.b32.xlu1 %v907_v35, %s1241_s15  ;;  %s1242_s15 = smov (!%p1073_p8), 32  }
 0xb04   : > { %v903_v36 = vpop.permute.xlu1 %902 }
 0xb05   : > { %v905_v37 = vmul.f32 %v903_v36, %v886_v26 }
 0xb07   : > { %v906_v38 = vsel %vm633_vm12, %v905_v37, %v845_v42 }
 0xb08   : > { %909 = vrot.lane.b32.xlu0 %v906_v38, %s1240_s29 }
 0xb0c   : > { %v915_v15 = vpop.permute.xlu1 %914 }
 0xb0d   : > { %917 = vst.msk [vmem:[#allocation5 + $0x8] sm:$0xff] %vm421_vm3, %v915_v15 }
 0xb77   : > { %921 = sbr.rel (%p1073_p8) target bundleno = 3191 (0xc77), region = 64 }
 0xb7a   : > { %v910_v39 = vpop.permute.xlu0 %909 }
 0xb7b   : > { %912 = vst.msk [vmem:[#allocation4 + $0x8] sm:$0xff] %vm421_vm3, %v910_v39 }
 0xb7c   : > { %v922_v40 = vpack.c.bf16 %v906_v38, %v906_v38  ;;  %v1094_v41 = vld [vmem:[%s1528_s7 + $0x8] sm:$0xff]  ;;  %v1093_v4 = vld [vmem:[%s1528_s7] sm:$0xff] }
 0xb7d   : > { %955 = vmatpush.bf16.msra.mxu0 %v1094_v41  ;;  %v1181_v43 = vld [vmem:[%s1529_s8] ss:$0 sm:$0xff] }
 0xb7e   : > { %932 = vrot.lane.b32.xlu0 %v922_v40, %s1242_s15 }
 0xb81   : > { %956 = vmatpush.bf16.msra.mxu0 %v1093_v4 }
 0xbf0   : > { %v933_v7 = vpop.permute.xlu0 %932 }
 0xbf1   : > { %1082 = vmatmul.msk.bf16.vlgmr.msra.gmra.mxu0 %vm421_vm3, %v933_v7 }
 0xc6e   : > { %v958_v44 = vpop.f32.mrf.mxu0 }
 0xc6f   : > { %v959_v45 = vadd.f32 %v1181_v43, %v958_v44 }
 0xc71   : > { %962 = vst [vmem:[#allocation6] sm:$0xff] %v959_v45 }
 0xc76   : > { %v960_v46 = vpop.f32.mrf.mxu0 }
 0xc77 PF: > { %p1099_p9 = scmp.eq.s32.totalorder %s1027_s12, 2  ;;  %s973_s24 = sshll.u32 %s1530_s9, 4  ;;  %s974_s24 = int_to_ptr.hbm [resolvable:$true] %s973_s24 }
 0xc78   : > { %s1243_s25 = smov [#allocation6]  }
 0xc79   : > { %s971_s26 = sshll.u32 %s1243_s25, 4  ;;  %s972_s26 = int_to_ptr.vmem [resolvable:$true] %s971_s26 }
 0xc7a   : > { %1096 = dma.vmem_to_hbm [thread:$0]  (%p1099_p9), %s972_s26, 128, %s974_s24, [#allocation7]  }
 0xc7b   : > { %1223 = dma.done.wait (%p1099_p9), [#allocation7], 128  }
 0xc7c   : > { %1225 = vsyncadd (%p1099_p9), [#allocation7], 4294967168 }
 0xc7d PF: > { %s20_s11 = sadd.s32 1, %s1236_s11   ;;  %s1533_s30 = smov %s1232_s10 }
 0xc7e   : > { %p17_p10 = scmp.ge.s32.totalorder %s20_s11, 5   ;;  %s1534_s10 = smov %s1536_s13 }
 0xc80   :  { %19 = sbr.rel (!%p17_p10) target bundleno = 2 (0x2), region = 98 }
 0xc85   :  { %987 = vsyncpa [#allocation7], 1 }
 0xc86   :  { %989 = vsyncpa [#allocation7 + $0x1], 1 }

</bundles_post_ra>
